<compile_context>
chip_gen: v6e
topology: v6e:2x2x1
jax: 0.10.0
libtpu: 0.0.40
codegen_flags: <defaults>
</compile_context>

<pallas_src>
import jax
import jax.numpy as jnp
from jax.experimental import pallas as pl
from jax.experimental.pallas import tpu as pltpu


MXU_DTYPE = jnp.bfloat16   # MXU operand dtype; accumulation stays f32


# ----------------------------------------------------------------------------
# JAX glue: dense normalized adjacency, pooling matrix, padding, parameters.
# ----------------------------------------------------------------------------

def build_a_hat(edge_index, num_nodes):
    """Dense normalized adjacency, PyG GCNConv style (self loops + sym norm)."""
    src, dst = edge_index[0], edge_index[1]
    A = jnp.zeros((num_nodes, num_nodes), jnp.float32)
    A = A.at[dst, src].set(1.0)                                 # src -> dst
    A = jnp.maximum(A, jnp.eye(num_nodes, dtype=jnp.float32))   # self loops
    deg = jnp.sum(A, axis=1)
    dinv = jnp.where(deg > 0, 1.0 / jnp.sqrt(deg), 0.0)
    return dinv[:, None] * A * dinv[None, :]


def build_pool_t(batch, num_graphs):
    """[B, N] one-hot graph-membership matrix (transposed pooling matrix)."""
    return (jnp.arange(num_graphs, dtype=jnp.int32)[:, None]
            == batch[None, :].astype(jnp.int32)).astype(jnp.float32)


def prepare_graph_batch(x, edge_index, batch, num_graphs, n_pad):
    """Pad one graph-batch's dense tensors to n_pad nodes (pad cols are zero)."""
    n = x.shape[0]
    pad = n_pad - n
    a_hat = jnp.pad(build_a_hat(edge_index, n), ((0, pad), (0, pad)))
    pool_t = jnp.pad(build_pool_t(batch, num_graphs), ((0, 0), (0, pad)))
    x_pad = jnp.pad(x, ((0, pad), (0, 0)))
    return x_pad, a_hat, pool_t


def init_params(key, num_features, hidden_dim):
    ks = jax.random.split(key, 8)
    scale = 0.1
    return {
        "w1": scale * jax.random.normal(ks[0], (num_features, hidden_dim), jnp.float32),
        "b1": jnp.zeros((1, hidden_dim), jnp.float32),
        "w2": scale * jax.random.normal(ks[1], (hidden_dim, hidden_dim), jnp.float32),
        "b2": jnp.zeros((1, hidden_dim), jnp.float32),
        "w3": scale * jax.random.normal(ks[2], (hidden_dim, hidden_dim), jnp.float32),
        "b3": jnp.zeros((1, hidden_dim), jnp.float32),
        "w_att": scale * jax.random.normal(ks[3], (hidden_dim, 1), jnp.float32),
        "b_att": scale * jax.random.normal(ks[4], (1, 1), jnp.float32),
        "w_proj": scale * jax.random.normal(ks[5], (hidden_dim, hidden_dim), jnp.float32),
        "b_proj": scale * jax.random.normal(ks[6], (1, hidden_dim), jnp.float32),
    }


def _pad_axis0(arr, total):
    pad = total - arr.shape[0]
    if pad == 0:
        return arr
    return jnp.pad(arr, ((0, pad),) + ((0, 0),) * (arr.ndim - 1))


# ----------------------------------------------------------------------------
# pallas_call wrapper
# ----------------------------------------------------------------------------

def malware_gnn_forward_batched(x_b, a_hat_b, pool_t_b, params, *, graphs_per_step=None):
    """Run G independent graph-batches; GB of them are fused per grid step."""
    G, N, F = x_b.shape
    B = pool_t_b.shape[1]
    H = params["w1"].shape[1]
    Hp = ((H + 127) // 128) * 128          # lane-dense output width
    assert N % 8 == 0, "pad node count to a multiple of 8 (sublane tile)"

    # GB graph-batches per grid step: aim for >= 8 output sublanes (dense vst);
    # pick GB so the number of steps stays even when targeting v7x (2 TCs).
    if graphs_per_step is None:
        GB = max(1, min(G, -(-8 // B)))
    else:
        GB = graphs_per_step
    n_steps = -(-G // GB)
    Gp = n_steps * GB
    GBN, GBB = GB * N, GB * B

    # Per-graph-batch dense tensors (padded along G to a multiple of GB).
    x_p = _pad_axis0(x_b, Gp).astype(MXU_DTYPE)              # [Gp, N, F]
    a_p = _pad_axis0(a_hat_b, Gp).astype(MXU_DTYPE)          # [Gp, N, N]
    pool_p = _pad_axis0(pool_t_b, Gp).astype(jnp.float32)    # [Gp, B, N]

    # Per-step block-diagonal pooling matrix + softmax-denominator map.
    #   poolt rows  : (gb_local, graph) -> its own valid nodes
    #   denmap rows : (gb_local, graph) -> ALL valid nodes of its graph-batch
    pool_steps = pool_p.reshape(n_steps, GB, B, N)
    eye_gb = jnp.eye(GB, dtype=jnp.float32)
    pool_bd = jnp.einsum("sgbn,gk->sgbkn", pool_steps, eye_gb).reshape(
        n_steps, GBB, GBN)
    valid = jnp.sum(pool_steps, axis=2)                       # 1 = real node
    den_bd = jnp.einsum("sgn,gk->sgkn", valid, eye_gb)
    den_bd = jnp.broadcast_to(den_bd[:, :, None], (n_steps, GB, B, GB, N)).reshape(
        n_steps, GBB, GBN)
    pool_all = jnp.concatenate([pool_bd, den_bd], axis=1).astype(MXU_DTYPE)

    # Consolidated parameters.
    w1 = params["w1"].astype(MXU_DTYPE)                                   # [F, H]
    w23 = jnp.stack([params["w2"], params["w3"]]).astype(MXU_DTYPE)       # [2, H, H]
    w_proj = (jnp.zeros((H, Hp), jnp.float32)
              .at[:, :H].set(params["w_proj"]).astype(MXU_DTYPE))         # [H, Hp]
    vp = jnp.zeros((6, Hp), jnp.float32)
    vp = vp.at[0, :H].set(params["b1"].reshape(H))
    vp = vp.at[1, :H].set(params["b2"].reshape(H))
    vp = vp.at[2, :H].set(params["b3"].reshape(H))
    vp = vp.at[3, :H].set(params["w_att"].reshape(H))
    vp = vp.at[4, 0].set(params["b_att"].reshape(()))
    vp = vp.at[5, :H].set(params["b_proj"].reshape(H))

    def kernel(x_ref, a_ref, pool_ref, w1_ref, w23_ref, wproj_ref, vp_ref, out_ref):
        a = a_ref[...]                                   # [GB, N, N] bf16
        vpv = vp_ref[...]                                # [6, Hp]    f32
        b1, b2, b3 = vpv[0:1, :H], vpv[1:2, :H], vpv[2:3, :H]
        w_att = vpv[3:4, :H]
        b_att = vpv[4:5, 0:1]
        b_proj = vpv[5:6, :]

        # GCN layer 1, reordered (A_hat @ X) @ W1 (F < H -> fewer N^2 MACs).
        ax = jnp.einsum("bij,bjf->bif", a, x_ref[...],
                        preferred_element_type=jnp.float32)        # [GB, N, F]
        h = jnp.dot(ax.reshape(GBN, F).astype(MXU_DTYPE), w1_ref[...],
                    preferred_element_type=jnp.float32)            # [GB*N, H]
        h = jnp.maximum(h + b1, 0.0)

        def gcn(hprev, w, bias):
            # Stacked weight matmul: one MXU pass over all GB graph-batches.
            hw = jnp.dot(hprev.astype(MXU_DTYPE), w,
                         preferred_element_type=jnp.float32)       # [GB*N, H]
            # Batched A_hat pass (block structure, no cross-graph-batch mixing).
            hh = jnp.einsum("bij,bjh->bih", a,
                            hw.reshape(GB, N, H).astype(MXU_DTYPE),
                            preferred_element_type=jnp.float32)    # [GB, N, H]
            return jnp.maximum(hh.reshape(GBN, H) + bias, 0.0)

        h = gcn(h, w23_ref[0], b2)
        h = gcn(h, w23_ref[1], b3)

        # Attention score tanh(h @ w_att + b_att): VPU multiply + lane reduce
        # (avoids a lane-sparse [N,H]x[H,1] MXU pass).
        s = jnp.tanh(jnp.sum(h * w_att, axis=-1, keepdims=True) + b_att)  # [GB*N,1]
        # softmax(dim=0) over each graph-batch's nodes: tanh is bounded in
        # [-1,1] so exp is stable without max subtraction; pad nodes are
        # excluded by the zero columns of poolt/denmap.
        e = jnp.exp(s)

        pool = pool_ref[...]                 # [2*GB*B, GB*N] bf16
        poolt = pool[:GBB]                   # per-graph membership (block diag)
        denmap = pool[GBB:]                  # per-row: valid nodes of its graph-batch

        he = (h * e).astype(MXU_DTYPE)
        num = jnp.dot(poolt, he, preferred_element_type=jnp.float32)            # [GB*B, H]
        den = jnp.dot(denmap, e.astype(MXU_DTYPE),
                      preferred_element_type=jnp.float32)                       # [GB*B, 1]
        # Deferred softmax normalization: one EUP reciprocal; the max() also
        # guards graph-batches with zero valid nodes (no NaN).
        pooled = num * pl.reciprocal(jnp.maximum(den, 1e-30), approx=True)

        # Projection into a lane-dense [GB*B, Hp] slab, then L2 normalize with
        # one EUP rsqrt; pad columns stay exactly 0 so they don't affect the
        # norm (matches F.normalize(x, p=2, dim=1, eps=1e-12) over H columns).
        proj = jnp.dot(pooled.astype(MXU_DTYPE), wproj_ref[...],
                       preferred_element_type=jnp.float32) + b_proj             # [GB*B, Hp]
        ss = jnp.sum(proj * proj, axis=-1, keepdims=True)
        out_ref[...] = proj * jax.lax.rsqrt(jnp.maximum(ss, 1e-24))

    in_specs = [
        pl.BlockSpec((GB, N, F), lambda g: (g, 0, 0)),                    # x
        pl.BlockSpec((GB, N, N), lambda g: (g, 0, 0)),                    # A_hat
        pl.BlockSpec((pl.Squeezed(), 2 * GBB, GBN), lambda g: (g, 0, 0)), # pool+den
        pl.BlockSpec((F, H), lambda g: (0, 0)),                           # w1
        pl.BlockSpec((2, H, H), lambda g: (0, 0, 0)),                     # w2, w3
        pl.BlockSpec((H, Hp), lambda g: (0, 0)),                          # w_proj
        pl.BlockSpec((6, Hp), lambda g: (0, 0)),                          # biases/att
    ]
    out_spec = pl.BlockSpec((GBB, Hp), lambda g: (g, 0))

    flops_step = (2 * GB * N * N * F + 2 * GBN * F * H            # layer 1
                  + 2 * (2 * GBN * H * H + 2 * GB * N * N * H)    # layers 2-3
                  + 2 * GBN * H                                   # attention
                  + 2 * GBB * GBN * H + 2 * GBB * GBN             # pooling + denom
                  + 2 * GBB * H * Hp)                             # projection
    inputs = (x_p, a_p, pool_all, w1, w23, w_proj, vp)
    cost = pl.CostEstimate(
        flops=int(n_steps * flops_step),
        transcendentals=int(n_steps * (2 * GBN + 2 * GBB)),       # tanh, exp, recip, rsqrt
        bytes_accessed=int(sum(a.size * a.dtype.itemsize for a in inputs)
                           + Gp * B * Hp * 4),
    )

    out = pl.pallas_call(
        kernel,
        out_shape=jax.ShapeDtypeStruct((Gp * B, Hp), jnp.float32),
        grid=(n_steps,),
        in_specs=in_specs,
        out_specs=out_spec,
        cost_estimate=cost,
        compiler_params=pltpu.CompilerParams(
            dimension_semantics=("parallel",),   # helps only on v7x (2 TCs); harmless elsewhere
            vmem_limit_bytes=32 * 1024 * 1024,   # far above demo needs; re-derive if N scales
        ),
    )(*inputs)

    return out.reshape(Gp, B, Hp)[:G, :, :H]


def malware_gnn_forward(x, edge_index, batch, num_graphs, params):
    """Single graph-batch convenience wrapper (num_graphs must be static)."""
    n = x.shape[0]
    n_pad = ((n + 7) // 8) * 8
    xp, ah, pt = prepare_graph_batch(x, edge_index, batch, num_graphs, n_pad)
    return malware_gnn_forward_batched(xp[None], ah[None], pt[None], params)[0]


if __name__ == "__main__":
    key = jax.random.PRNGKey(0)
    G = 8                 # independent graph-batches; 4 fused per grid step -> grid=(2,)
    N_RAW = 14            # nodes per graph-batch (padded to 16 = next mult of 8)
    N_PAD = ((N_RAW + 7) // 8) * 8
    F_IN, HIDDEN, B = 8, 32, 2
    E = 24

    k_par, k_data = jax.random.split(key)
    params = init_params(k_par, F_IN, HIDDEN)

    xs, ahs, pts = [], [], []
    for _ in range(G):
        k_data, k_x, k_s, k_d = jax.random.split(k_data, 4)
        x = jax.random.normal(k_x, (N_RAW, F_IN), jnp.float32)
        src = jax.random.randint(k_s, (E,), 0, N_RAW, dtype=jnp.int32)
        dst = jax.random.randint(k_d, (E,), 0, N_RAW, dtype=jnp.int32)
        edge_index = jnp.stack([jnp.concatenate([src, dst]),
                                jnp.concatenate([dst, src])], axis=0)   # undirected
        batch = jnp.concatenate([jnp.zeros(N_RAW // 2, jnp.int32),
                                 jnp.ones(N_RAW - N_RAW // 2, jnp.int32)])
        xp, ah, pt = prepare_graph_batch(x, edge_index, batch, B, N_PAD)
        xs.append(xp); ahs.append(ah); pts.append(pt)

    x_b = jnp.stack(xs)          # [G, N, F]
    a_hat_b = jnp.stack(ahs)     # [G, N, N]
    pool_t_b = jnp.stack(pts)    # [G, B, N]

    out = malware_gnn_forward_batched(x_b, a_hat_b, pool_t_b, params)
    jax.block_until_ready(out)

    assert out.shape == (G, B, HIDDEN)
    assert bool(jnp.all(jnp.isfinite(out)))
    print("KERNEL_OK")
</pallas_src>

<mosaic_0001>
module attributes {stable_mosaic.version = 11 : i64} {
  func.func @kernel(%arg0: i32, %arg1: memref<4x16x8xbf16, #tpu.memory_space<vmem>>, %arg2: memref<4x16x16xbf16, #tpu.memory_space<vmem>>, %arg3: memref<1x16x64xbf16, #tpu.memory_space<vmem>>, %arg4: memref<8x32xbf16, #tpu.memory_space<vmem>>, %arg5: memref<2x32x32xbf16, #tpu.memory_space<vmem>>, %arg6: memref<32x128xbf16, #tpu.memory_space<vmem>>, %arg7: memref<6x128xf32, #tpu.memory_space<vmem>>, %arg8: memref<8x128xf32, #tpu.memory_space<vmem>>) attributes {dimension_semantics = [#tpu.dimension_semantics<parallel>], iteration_bounds = array<i64: 2>, scalar_prefetch = 0 : i64, scratch_operands = 0 : i64, tpu.core_type = #tpu.core_type<tc>, window_params = [{transform_indices = @transform_0, window_bounds = array<i64: 4, 16, 8>}, {transform_indices = @transform_1, window_bounds = array<i64: 4, 16, 16>}, {transform_indices = @transform_2, window_bounds = array<i64: 1, 16, 64>}, {pipeline_mode = #tpu.pipeline_mode<synchronous>, transform_indices = @transform_3, window_bounds = array<i64: 8, 32>}, {pipeline_mode = #tpu.pipeline_mode<synchronous>, transform_indices = @transform_4, window_bounds = array<i64: 2, 32, 32>}, {pipeline_mode = #tpu.pipeline_mode<synchronous>, transform_indices = @transform_5, window_bounds = array<i64: 32, 128>}, {pipeline_mode = #tpu.pipeline_mode<synchronous>, transform_indices = @transform_6, window_bounds = array<i64: 6, 128>}, {transform_indices = @transform_7, window_bounds = array<i64: 8, 128>}]} {
    %c0 = arith.constant 0 : index
    %c0_0 = arith.constant 0 : index
    %c0_1 = arith.constant 0 : index
    %0 = vector.load %arg2[%c0, %c0_0, %c0_1] : memref<4x16x16xbf16, #tpu.memory_space<vmem>>, vector<4x16x16xbf16>
    %c0_2 = arith.constant 0 : index
    %c0_3 = arith.constant 0 : index
    %1 = vector.load %arg7[%c0_2, %c0_3] : memref<6x128xf32, #tpu.memory_space<vmem>>, vector<6x128xf32>
    %2 = vector.extract_strided_slice %1 {offsets = [0, 0], sizes = [1, 32], strides = [1, 1]} : vector<6x128xf32> to vector<1x32xf32>
    %3 = vector.extract_strided_slice %1 {offsets = [1, 0], sizes = [1, 32], strides = [1, 1]} : vector<6x128xf32> to vector<1x32xf32>
    %4 = vector.extract_strided_slice %1 {offsets = [2, 0], sizes = [1, 32], strides = [1, 1]} : vector<6x128xf32> to vector<1x32xf32>
    %5 = vector.extract_strided_slice %1 {offsets = [3, 0], sizes = [1, 32], strides = [1, 1]} : vector<6x128xf32> to vector<1x32xf32>
    %6 = vector.extract_strided_slice %1 {offsets = [4, 0], sizes = [1, 1], strides = [1, 1]} : vector<6x128xf32> to vector<1x1xf32>
    %7 = vector.extract_strided_slice %1 {offsets = [5, 0], sizes = [1, 128], strides = [1, 1]} : vector<6x128xf32> to vector<1x128xf32>
    %c0_4 = arith.constant 0 : index
    %c0_5 = arith.constant 0 : index
    %c0_6 = arith.constant 0 : index
    %8 = vector.load %arg1[%c0_4, %c0_5, %c0_6] : memref<4x16x8xbf16, #tpu.memory_space<vmem>>, vector<4x16x8xbf16>
    "tpu.trace_start"() <{level = 10 : i32, message = "bij,bjf->bif"}> : () -> ()
    %cst = arith.constant dense<0.000000e+00> : vector<4x16x8xf32>
    %9 = tpu.matmul %0, %8, %cst {dimension_numbers = #tpu.dot_dimension_numbers<[2], [1], [1], [2], [0, 0, 0, 1, 1, 2], [0], [0]>} : vector<4x16x16xbf16>, vector<4x16x8xbf16>, vector<4x16x8xf32> -> vector<4x16x8xf32>
    "tpu.trace_stop"() : () -> ()
    %10 = vector.shape_cast %9 : vector<4x16x8xf32> to vector<64x8xf32>
    %11 = arith.truncf %10 : vector<64x8xf32> to vector<64x8xbf16>
    %c0_7 = arith.constant 0 : index
    %c0_8 = arith.constant 0 : index
    %12 = vector.load %arg4[%c0_7, %c0_8] : memref<8x32xbf16, #tpu.memory_space<vmem>>, vector<8x32xbf16>
    %cst_9 = arith.constant dense<0.000000e+00> : vector<64x32xf32>
    %13 = tpu.matmul %11, %12, %cst_9 {dimension_numbers = #tpu.dot_dimension_numbers<[1], [0], [0], [1], [0, 0, 1, 1], [], []>} : vector<64x8xbf16>, vector<8x32xbf16>, vector<64x32xf32> -> vector<64x32xf32>
    %14 = vector.broadcast %2 : vector<1x32xf32> to vector<64x32xf32>
    %15 = arith.addf %13, %14 : vector<64x32xf32>
    %cst_10 = arith.constant 0.000000e+00 : f32
    %16 = vector.broadcast %cst_10 : f32 to vector<64x32xf32>
    %17 = arith.maximumf %15, %16 : vector<64x32xf32>
    %c0_11 = arith.constant 0 : index
    %c0_12 = arith.constant 0 : index
    %c0_13 = arith.constant 0 : index
    %18 = vector.load %arg5[%c0_11, %c0_12, %c0_13] : memref<2x32x32xbf16, #tpu.memory_space<vmem>>, vector<1x32x32xbf16>
    %19 = vector.shape_cast %18 : vector<1x32x32xbf16> to vector<32x32xbf16>
    %20 = arith.truncf %17 : vector<64x32xf32> to vector<64x32xbf16>
    %cst_14 = arith.constant dense<0.000000e+00> : vector<64x32xf32>
    %21 = tpu.matmul %20, %19, %cst_14 {dimension_numbers = #tpu.dot_dimension_numbers<[1], [0], [0], [1], [0, 0, 1, 1], [], []>} : vector<64x32xbf16>, vector<32x32xbf16>, vector<64x32xf32> -> vector<64x32xf32>
    %22 = vector.shape_cast %21 : vector<64x32xf32> to vector<4x16x32xf32>
    %23 = arith.truncf %22 : vector<4x16x32xf32> to vector<4x16x32xbf16>
    "tpu.trace_start"() <{level = 10 : i32, message = "bij,bjh->bih"}> : () -> ()
    %cst_15 = arith.constant dense<0.000000e+00> : vector<4x16x32xf32>
    %24 = tpu.matmul %0, %23, %cst_15 {dimension_numbers = #tpu.dot_dimension_numbers<[2], [1], [1], [2], [0, 0, 0, 1, 1, 2], [0], [0]>} : vector<4x16x16xbf16>, vector<4x16x32xbf16>, vector<4x16x32xf32> -> vector<4x16x32xf32>
    "tpu.trace_stop"() : () -> ()
    %25 = vector.shape_cast %24 : vector<4x16x32xf32> to vector<64x32xf32>
    %26 = vector.broadcast %3 : vector<1x32xf32> to vector<64x32xf32>
    %27 = arith.addf %25, %26 : vector<64x32xf32>
    %cst_16 = arith.constant 0.000000e+00 : f32
    %28 = vector.broadcast %cst_16 : f32 to vector<64x32xf32>
    %29 = arith.maximumf %27, %28 : vector<64x32xf32>
    %c1 = arith.constant 1 : index
    %c0_17 = arith.constant 0 : index
    %c0_18 = arith.constant 0 : index
    %30 = vector.load %arg5[%c1, %c0_17, %c0_18] : memref<2x32x32xbf16, #tpu.memory_space<vmem>>, vector<1x32x32xbf16>
    %31 = vector.shape_cast %30 : vector<1x32x32xbf16> to vector<32x32xbf16>
    %32 = arith.truncf %29 : vector<64x32xf32> to vector<64x32xbf16>
    %cst_19 = arith.constant dense<0.000000e+00> : vector<64x32xf32>
    %33 = tpu.matmul %32, %31, %cst_19 {dimension_numbers = #tpu.dot_dimension_numbers<[1], [0], [0], [1], [0, 0, 1, 1], [], []>} : vector<64x32xbf16>, vector<32x32xbf16>, vector<64x32xf32> -> vector<64x32xf32>
    %34 = vector.shape_cast %33 : vector<64x32xf32> to vector<4x16x32xf32>
    %35 = arith.truncf %34 : vector<4x16x32xf32> to vector<4x16x32xbf16>
    "tpu.trace_start"() <{level = 10 : i32, message = "bij,bjh->bih"}> : () -> ()
    %cst_20 = arith.constant dense<0.000000e+00> : vector<4x16x32xf32>
    %36 = tpu.matmul %0, %35, %cst_20 {dimension_numbers = #tpu.dot_dimension_numbers<[2], [1], [1], [2], [0, 0, 0, 1, 1, 2], [0], [0]>} : vector<4x16x16xbf16>, vector<4x16x32xbf16>, vector<4x16x32xf32> -> vector<4x16x32xf32>
    "tpu.trace_stop"() : () -> ()
    %37 = vector.shape_cast %36 : vector<4x16x32xf32> to vector<64x32xf32>
    %38 = vector.broadcast %4 : vector<1x32xf32> to vector<64x32xf32>
    %39 = arith.addf %37, %38 : vector<64x32xf32>
    %cst_21 = arith.constant 0.000000e+00 : f32
    %40 = vector.broadcast %cst_21 : f32 to vector<64x32xf32>
    %41 = arith.maximumf %39, %40 : vector<64x32xf32>
    %42 = vector.broadcast %5 : vector<1x32xf32> to vector<64x32xf32>
    %43 = arith.mulf %41, %42 : vector<64x32xf32>
    %cst_22 = arith.constant dense<0.000000e+00> : vector<64xf32>
    %44 = vector.multi_reduction <add>, %43, %cst_22 [1] : vector<64x32xf32> to vector<64xf32>
    %45 = vector.shape_cast %44 : vector<64xf32> to vector<64x1xf32>
    %46 = vector.broadcast %6 : vector<1x1xf32> to vector<64x1xf32>
    %47 = arith.addf %45, %46 : vector<64x1xf32>
    %48 = math.tanh %47 : vector<64x1xf32>
    %49 = math.exp %48 : vector<64x1xf32>
    %c0_23 = arith.constant 0 : index
    %c0_24 = arith.constant 0 : index
    %c0_25 = arith.constant 0 : index
    %50 = vector.load %arg3[%c0_23, %c0_24, %c0_25] : memref<1x16x64xbf16, #tpu.memory_space<vmem>>, vector<1x16x64xbf16>
    %51 = vector.shape_cast %50 : vector<1x16x64xbf16> to vector<16x64xbf16>
    %52 = vector.extract_strided_slice %51 {offsets = [0, 0], sizes = [8, 64], strides = [1, 1]} : vector<16x64xbf16> to vector<8x64xbf16>
    %53 = vector.extract_strided_slice %51 {offsets = [8, 0], sizes = [8, 64], strides = [1, 1]} : vector<16x64xbf16> to vector<8x64xbf16>
    %54 = vector.broadcast %49 : vector<64x1xf32> to vector<64x32xf32>
    %55 = arith.mulf %41, %54 : vector<64x32xf32>
    %56 = arith.truncf %55 : vector<64x32xf32> to vector<64x32xbf16>
    %cst_26 = arith.constant dense<0.000000e+00> : vector<8x32xf32>
    %57 = tpu.matmul %52, %56, %cst_26 {dimension_numbers = #tpu.dot_dimension_numbers<[1], [0], [0], [1], [0, 0, 1, 1], [], []>} : vector<8x64xbf16>, vector<64x32xbf16>, vector<8x32xf32> -> vector<8x32xf32>
    %58 = arith.truncf %49 : vector<64x1xf32> to vector<64x1xbf16>
    %cst_27 = arith.constant dense<0.000000e+00> : vector<8x1xf32>
    %59 = tpu.matmul %53, %58, %cst_27 {dimension_numbers = #tpu.dot_dimension_numbers<[1], [0], [0], [1], [0, 0, 1, 1], [], []>} : vector<8x64xbf16>, vector<64x1xbf16>, vector<8x1xf32> -> vector<8x1xf32>
    %cst_28 = arith.constant 1.000000e-30 : f32
    %60 = vector.broadcast %cst_28 : f32 to vector<8x1xf32>
    %61 = arith.maximumf %59, %60 : vector<8x1xf32>
    %62 = tpu.reciprocal %61 {approx = true} : vector<8x1xf32> -> vector<8x1xf32>
    %63 = vector.broadcast %62 : vector<8x1xf32> to vector<8x32xf32>
    %64 = arith.mulf %57, %63 : vector<8x32xf32>
    %65 = arith.truncf %64 : vector<8x32xf32> to vector<8x32xbf16>
    %c0_29 = arith.constant 0 : index
    %c0_30 = arith.constant 0 : index
    %66 = vector.load %arg6[%c0_29, %c0_30] : memref<32x128xbf16, #tpu.memory_space<vmem>>, vector<32x128xbf16>
    %cst_31 = arith.constant dense<0.000000e+00> : vector<8x128xf32>
    %67 = tpu.matmul %65, %66, %cst_31 {dimension_numbers = #tpu.dot_dimension_numbers<[1], [0], [0], [1], [0, 0, 1, 1], [], []>} : vector<8x32xbf16>, vector<32x128xbf16>, vector<8x128xf32> -> vector<8x128xf32>
    %68 = vector.broadcast %7 : vector<1x128xf32> to vector<8x128xf32>
    %69 = arith.addf %67, %68 : vector<8x128xf32>
    %70 = arith.mulf %69, %69 : vector<8x128xf32>
    %cst_32 = arith.constant dense<0.000000e+00> : vector<8xf32>
    %71 = vector.multi_reduction <add>, %70, %cst_32 [1] : vector<8x128xf32> to vector<8xf32>
    %72 = vector.shape_cast %71 : vector<8xf32> to vector<8x1xf32>
    %cst_33 = arith.constant 1.000000e-24 : f32
    %73 = vector.broadcast %cst_33 : f32 to vector<8x1xf32>
    %74 = arith.maximumf %72, %73 : vector<8x1xf32>
    %75 = math.rsqrt %74 : vector<8x1xf32>
    %76 = vector.broadcast %75 : vector<8x1xf32> to vector<8x128xf32>
    %77 = arith.mulf %69, %76 : vector<8x128xf32>
    %c0_34 = arith.constant 0 : index
    %c0_35 = arith.constant 0 : index
    %78 = vector.load %arg8[%c0_34, %c0_35] : memref<8x128xf32, #tpu.memory_space<vmem>>, vector<8x128xf32>
    tpu.vector_store %arg8[%c0_34, %c0_35], %77 {strides = array<i32>} : memref<8x128xf32, #tpu.memory_space<vmem>>, vector<8x128xf32>,
    return
  }
  func.func @transform_0(%arg0: i32) -> (i32, i32, i32) {
    %c0_i32 = arith.constant 0 : i32
    %c0_i32_0 = arith.constant 0 : i32
    %c0_i32_1 = arith.constant 0 : i32
    return %arg0, %c0_i32, %c0_i32_0 : i32, i32, i32
  }
  func.func @transform_1(%arg0: i32) -> (i32, i32, i32) {
    %c0_i32 = arith.constant 0 : i32
    %c0_i32_0 = arith.constant 0 : i32
    %c0_i32_1 = arith.constant 0 : i32
    return %arg0, %c0_i32, %c0_i32_0 : i32, i32, i32
  }
  func.func @transform_2(%arg0: i32) -> (i32, i32, i32) {
    %c0_i32 = arith.constant 0 : i32
    %c0_i32_0 = arith.constant 0 : i32
    %c0_i32_1 = arith.constant 0 : i32
    return %arg0, %c0_i32, %c0_i32_0 : i32, i32, i32
  }
  func.func @transform_3(%arg0: i32) -> (i32, i32) {
    %c0_i32 = arith.constant 0 : i32
    %c0_i32_0 = arith.constant 0 : i32
    %c0_i32_1 = arith.constant 0 : i32
    return %c0_i32, %c0_i32_0 : i32, i32
  }
  func.func @transform_4(%arg0: i32) -> (i32, i32, i32) {
    %c0_i32 = arith.constant 0 : i32
    %c0_i32_0 = arith.constant 0 : i32
    %c0_i32_1 = arith.constant 0 : i32
    %c0_i32_2 = arith.constant 0 : i32
    return %c0_i32, %c0_i32_0, %c0_i32_1 : i32, i32, i32
  }
  func.func @transform_5(%arg0: i32) -> (i32, i32) {
    %c0_i32 = arith.constant 0 : i32
    %c0_i32_0 = arith.constant 0 : i32
    %c0_i32_1 = arith.constant 0 : i32
    return %c0_i32, %c0_i32_0 : i32, i32
  }
  func.func @transform_6(%arg0: i32) -> (i32, i32) {
    %c0_i32 = arith.constant 0 : i32
    %c0_i32_0 = arith.constant 0 : i32
    %c0_i32_1 = arith.constant 0 : i32
    return %c0_i32, %c0_i32_0 : i32, i32
  }
  func.func @transform_7(%arg0: i32) -> (i32, i32) {
    %c0_i32 = arith.constant 0 : i32
    %c0_i32_0 = arith.constant 0 : i32
    return %arg0, %c0_i32 : i32, i32
  }
}

</mosaic_0001>

<bundles_post_ra>
// kernel: tpu_custom_call.1
= control target key start
LH: loop header
LB: loop body
LE: loop exit
PB: predicated region body
PF: predicated region fallthrough
CT: control target
= control target key end

     0   :  { %s2687_s0 = inlined_call_operand.vmem [shape: bf16[8,16,8], index: 0, kind: input, shape index: {}]   ;;  %s2688_s1 = inlined_call_operand.vmem [shape: bf16[8,16,16], index: 1, kind: input, shape index: {}]   ;;  %s2689_s2 = inlined_call_operand.hbm [shape: bf16[2,16,64], index: 2, kind: input, shape index: {}]   ;;  %s2690_s3 = inlined_call_operand.hbm [shape: bf16[8,32], index: 3, kind: input, shape index: {}]   ;;  %s2691_s4 = inlined_call_operand.vmem [shape: bf16[2,32,32], index: 4, kind: input, shape index: {}]   ;;  %s2692_s5 = inlined_call_operand.hbm [shape: bf16[32,128], index: 5, kind: input, shape index: {}]   ;;  %s2693_s6 = inlined_call_operand.vmem [shape: f32[6,128], index: 6, kind: input, shape index: {}]   ;;  %s2694_s7 = inlined_call_operand.hbm [shape: f32[16,128], index: 7, kind: output, shape index: {}]  }
   0x1   :  { %2702 = sst [smem:[#allocation15_spill]] %s2690_s3 }
   0x2   :  { %12 = vsyncpa [#allocation3], 0 }
   0x3   :  { %14 = vsyncpa [#allocation3 + $0x1], 0 }
   0x4   :  { %15 = vsyncpa [#allocation6], 0 }
   0x5   :  { %16 = vsyncpa [#allocation4], 0 }
   0x6   :  { %18 = vsyncpa [#allocation4 + $0x1], 0  ;;  %s2294_s24 = smov 0   ;;  %s2296_s25 = smov 0  }
   0x7   :  { %s2298_s26 = smov 0   ;;  %s2300_s27 = smov 0  }
   0x8 LB: > { %2703 = sst [smem:[#allocation12_spill]] %s2239_s26  ;;  %s2315_s28 = sadd.s32 4294967295, %s2243_s27   ;;  %s2243_s27 = sphi %s2300_s27, %s2722_s27   ;;  %s2239_s26 = sphi %s2298_s26, %s2724_s26   ;;  %s2235_s25 = sphi %s2296_s25, %s2726_s25   ;;  %s2231_s24 = sphi %s2294_s24, %s2725_s24  }
   0x9   : > { %s1707_s29 = sadd.s32 4294967294, %s2243_s27   ;;  %s2319_s30 = sadd.s32 1, %s2243_s27  }
   0xa   : > { %2704 = sst [smem:[#allocation13_spill]] %s2319_s30  ;;  %s83_s8 = sadd.s32 1, %s2239_s26 }
   0xb   : > { %s80_s9 = ssub.s32 %s2243_s27, %s2319_s30  ;;  %p90_p0 = scmp.ne.s32.totalorder %s2239_s26, %s2235_s25 }
   0xc   : > { %p81_p1 = scmp.eq.s32.totalorder %s80_s9, 0  ;;  %p91_p2 = scmp.eq.s32.totalorder %s2243_s27, 0 }
   0xd   : > { %p96_p3 = scmp.ne.s32.totalorder %s2235_s25, %s2231_s24  ;;  %p2695_p4 = scmp.eq.s32.totalorder %s2315_s28, 0 }
   0xe   : > { %s2331_s10 = scalar_select %p81_p1, %s2239_s26, %s83_s8  }
   0xf   : > { %p2333_p5 = por %p91_p2, %p90_p0  ;;  %p2339_p6 = por %p2695_p4, %p96_p3 }
  0x10   : > { %2705 = sst [smem:[#allocation14_spill]] %s2331_s10  ;;  %p204_p7 = scmp.eq.s32.totalorder %s2315_s28, 1 }
  0x11   : > { %s2707_s12 = scalar_select %p2339_p6, 1, 0 }
  0x12   : > { %p210_p8 = scmp.eq.s32.totalorder %s1707_s29, 1  ;;  %p1708_p9 = scmp.ge.s32.totalorder %s2243_s27, 1 }
  0x13   : > { %p217_p10 = scmp.lt.s32.totalorder %s2243_s27, 3  ;;  %p2346_p11 = por %p204_p7, %p90_p0 }
  0x14   : > { %p2350_p12 = por %p210_p8, %p96_p3  ;;  %s2245_s16 = smov [#allocation5]  }
  0x15   : > { %s2708_s13 = scalar_select %p2346_p11, 1, 0 }
  0x16   : > { %s2709_s14 = scalar_select %p2350_p12, 1, 0 }
  0x17   : > { %p2354_p13 = pnand %p1708_p9, %p217_p10  ;;  %s230_s17 = sshll.u32 %s2245_s16, 4  ;;  %s231_s17 = int_to_ptr.vmem [resolvable:$true] %s230_s17 }
  0x18   : > { %p2000_p4 = scmp.lt.s32.totalorder %s2243_s27, 2  ;;  %p2711_p0 = scmp.eq.s32.totalorder %s2315_s28, 0 }
  0x19   : > { %s2710_s15 = scalar_select %p2354_p13, 1, 0 }
  0x1a   : > { %p1983_p2 = pneg %p2354_p13  ;;  %p2370_p3 = pnand %p2000_p4, %p2333_p5 }
  0x1b   : > { %s2246_s20 = smov [#allocation7]   ;;  %s2106_s22 = scalar_lea.vmem %s231_s17, 64 }
  0x1c   : > { %p2364_p7 = pnand %p1983_p2, %p2711_p0  ;;  %s243_s21 = sshll.u32 %s2246_s20, 4  ;;  %s244_s21 = int_to_ptr.vmem [resolvable:$true] %s243_s21 }
  0x1d   : > { %p2107_p9 = scmp.ne.s32.totalorder %s231_s17, %s2106_s22  ;;  %p2114_p0 = scmp.lt.s32.totalorder %s231_s17, %s231_s17 }
  0x1e   : > { %p2097_p8 = pneg %p2364_p7  ;;  %p2115_p1 = scmp.lt.s32.totalorder %s2106_s22, %s2106_s22 }
  0x20   : > { %p2109_p10 = pnand %p2107_p9, %p2097_p8  ;;  %p2116_p12 = por %p2115_p1, %p2114_p0 }
  0x22   : > { %p2110_p2 = pneg %p2109_p10 }
  0x24   : > { %p2117_p11 = pnand %p2116_p12, %p2110_p2 }
  0x26   : > { %2120 = shalt.err (!%p2117_p11)
}
  0x27   : > { %s2714_s3 = sld [smem:[#allocation15_spill]]  ;;  %s280_s8 = sand.u32 1, %s2239_s26  }
  0x28   : > { %s2132_s9 = scalar_lea.vmem %s244_s21, 256  ;;  %p2140_p10 = scmp.lt.s32.totalorder %s244_s21, %s244_s21 }
  0x29   : > { %p2133_p4 = scmp.ne.s32.totalorder %s244_s21, %s2132_s9  ;;  %p2141_p6 = scmp.lt.s32.totalorder %s2132_s9, %s2132_s9 }
  0x2b   : > { %p2135_p5 = pnand %p2133_p4, %p2097_p8  ;;  %p2142_p1 = por %p2141_p6, %p2140_p10 }
  0x2d   : > { %1986 = dma.hbm_to_vmem [thread:$0]  (!%p2364_p7), %s2714_s3, 64, %s231_s17, [#allocation6]  }
  0x2e   : > { %p2136_p9 = pneg %p2135_p5 }
  0x30   : > { %p2143_p12 = pnand %p2142_p1, %p2136_p9 }
  0x32   : > { %2146 = shalt.err (!%p2143_p12)
}
  0x33   : > { %s2247_s11 = smov 64   ;;  %s2248_s16 = smov 4  }
  0x34   : > { %1989 = dma.hbm_to_vmem [thread:$0]  (!%p2364_p7), %s2692_s5, 256, %s244_s21, [#allocation6], %s2247_s11, %s2247_s11, %s2248_s16  }
  0x35   : > { %s1712_s22 = sshll.u32 %s280_s8, 3  ;;  %s1775_s23 = sshll.u32 %s2243_s27, 7 }
  0x36   : > { %s2400_s3 = scalar_lea.hbm %s2689_s2, %s1775_s23  ;;  %s284_s10 = scalar_lea.vmem [#allocation2], %s1712_s22 }
  0x37   : > { %s291_s26 = sshll.u32 %s284_s10, 4  ;;  %s2404_s18 = scalar_lea.sflag [#allocation3], %s280_s8  ;;  %s2402_s26 = int_to_ptr.vmem [resolvable:$true] %s291_s26 }
  0x38   : > { %s2147_s30 = scalar_lea.hbm %s2400_s3, 128  ;;  %p2149_p11 = pneg %p2370_p3 }
  0x39   : > { %p2148_p6 = scmp.ne.s32.totalorder %s2400_s3, %s2147_s30  ;;  %s2152_s20 = scalar_lea.hbm %s2689_s2, 256 }
  0x3a   : > { %p2153_p2 = scmp.lt.s32.totalorder %s2400_s3, %s2689_s2  ;;  %p2154_p0 = scmp.lt.s32.totalorder %s2152_s20, %s2147_s30 }
  0x3b   : > { %p2150_p7 = pnand %p2149_p11, %p2148_p6 }
  0x3c   : > { %p2155_p4 = por %p2154_p0, %p2153_p2 }
  0x3d   : > { %p2151_p8 = pneg %p2150_p7 }
  0x3f   : > { %p2156_p5 = pnand %p2155_p4, %p2151_p8 }
  0x41   : > { %2159 = shalt.err (!%p2156_p5)
}
  0x42   : > { %s2160_s10 = scalar_lea.vmem %s2402_s26, 128  ;;  %s2249_s8 = smov [#allocation2]  }
  0x43   : > { %p2161_p9 = scmp.ne.s32.totalorder %s2402_s26, %s2160_s10  ;;  %s2165_s22 = sshll.u32 %s2249_s8, 4  ;;  %s2166_s22 = int_to_ptr.vmem [resolvable:$false] %s2165_s22 }
  0x44   : > { %s2167_s9 = scalar_lea.vmem %s2166_s22, 256  ;;  %p2168_p12 = scmp.lt.s32.totalorder %s2402_s26, %s2166_s22 }
  0x45   : > { %p2163_p10 = pnand %p2161_p9, %p2149_p11  ;;  %p2169_p6 = scmp.lt.s32.totalorder %s2167_s9, %s2160_s10 }
  0x47   : > { %p2164_p1 = pneg %p2163_p10  ;;  %p2170_p7 = por %p2169_p6, %p2168_p12 }
  0x49   : > { %p2171_p13 = pnand %p2170_p7, %p2164_p1 }
  0x4b   : > { %2174 = shalt.err (!%p2171_p13)
}
  0x4c   : > { %1993 = dma.hbm_to_vmem [thread:$0]  (!%p2370_p3), %s2400_s3, 128, %s2402_s26, %s2404_s18, %s2247_s11, %s2247_s11, %s2248_s16  }
  0x4d   : > { %p2715_p11 = scmp.ne.s32.totalorder %s2710_s15, 0 }
  0x4e   : > { %s2431_s30 = sand.u32 (!%p2715_p11), 1, %s2235_s25   ;;  %p2716_p13 = scmp.ne.s32.totalorder (!%p2715_p11), %s2707_s12, 0 }
  0x4f   : > { %303 = sbr.rel (%p2715_p11) target bundleno = 2226 (0x8b2), region = 48  ;;  %s1716_s21 = sshll.u32 (!%p2715_p11), %s2431_s30, 3 }
  0x50   : > { %s306_s17 = scalar_lea.sflag (!%p2715_p11), [#allocation3], %s2431_s30  ;;  %s2437_s19 = scalar_lea.vmem (!%p2715_p11), [#allocation2], %s1716_s21 }
  0x54   : > { %2218 = dma.done.wait (%p2716_p13), %s306_s17, 128  }
  0x55   : > { %2220 = vsyncadd (%p2716_p13), %s306_s17, 4294967168  ;;  %p2717_p3 = scmp.eq.s32.totalorder %s2315_s28, 0 }
  0x57   : > { %2222 = dma.done.wait (%p2717_p3), [#allocation6], 320   ;;  %p2718_p8 = pmov %p2717_p3 }
  0x58   : > { %s1720_s3 = sshll.u32 %s2315_s28, 2  ;;  %v2250_v0 = vmov 0.0   ;;  %vm2251_vm0 = vmmov 0   ;;  %vm403_vm1 = vcmask 130048   ;;  %v617_v9 = vld [vmem:[#allocation5] sm:$0xf]  ;;  %v618_v33 = vlaneseq }
  0x59   : > { %2224 = vsyncadd (%p2718_p8), [#allocation6], 4294966976  ;;  %1832 = vmatprep.subr.bf16.mxu0 %v2250_v0  ;;  %1838 = vmatprep.subr.bf16.mxu1 %v2250_v0  ;;  %p361_p2 = scmp.lt.s32.totalorder %s1720_s3, 7  ;;  %vm635_vm2 = vcmask 1043456   ;;  %vm622_vm3 = vcmask 64512   ;;  %v2053_v31 = vld [vmem:[%s2691_s4 + $0x8] sm:$0xff]  }
  0x5a   : > { %1834 = vmatprep.mubr.msk.bf16.mxu0 %vm2251_vm0, %v2250_v0  ;;  %1840 = vmatprep.mubr.msk.bf16.mxu1 %vm2251_vm0, %v2250_v0  ;;  %v637_v10 = vsel %vm635_vm2, %v617_v9, 0  ;;  %v2054_v32 = vld [vmem:[%s2691_s4] sm:$0xff]   ;;  %v2496_v34 = vshrl.u32 %v618_v33, 7  ;;  %vm732_vm4 = vcmask 261120   ;;  %vm1410_vm5 = vcmask 523264   ;;  %s359_s15 = scalar_lea.vmem [#allocation8], %s1716_s21 }
  0x5b   : > { %s2728_s3 = smov (!%p361_p2, %s1720_s3), 7  ;;  %v2502_v36 = vld [vmem:[%s2693_s6] sm:$0x3f]  ;;  %s1581_s23 = scalar_lea.sflag [#allocation4], %s2431_s30 }
  0x5c   : > { %s1776_s26 = sshll.u32 %s2728_s3, 3  ;;  %v620_v35 = vsub.s32 0, %v2496_v34  ;;  %p2719_p4 = scmp.ne.s32.totalorder %s2708_s13, 0 }
  0x5d   : > { %s365_s11 = scalar_lea.vmem %s2687_s0, %s1776_s26  ;;  %s372_s20 = scalar_lea.vmem %s2688_s1, %s1776_s26 }
  0x5e   : > { %v2045_v1 = vld [vmem:[%s365_s11] sm:$0xff]   ;;  %v2046_v2 = vld [vmem:[%s365_s11 + $0x8] sm:$0xff]   ;;  %v2049_v5 = vld [vmem:[%s365_s11 + $0x10] sm:$0xff]   ;;  %v621_v38 = vrot.slane %v2502_v36, %v620_v35  ;;  %s2253_s10 = smov [#allocation8]  }
  0x5f   : > { %1833 = vmatpush3.bf16.msra.mxu0 %v2045_v1  ;;  %v2460_v3 = vld [vmem:[%s372_s20] sm:$0xff]   ;;  %1839 = vmatpush3.bf16.msra.mxu1 %v2046_v2  ;;  %v2462_v4 = vld [vmem:[%s372_s20 + $0x8] sm:$0xff]   ;;  %v2050_v6 = vld [vmem:[%s365_s11 + $0x18] sm:$0xff]   ;;  %s1594_s11 = sshll.u32 %s359_s15, 4  ;;  %s2179_s8 = sshll.u32 %s2253_s10, 4  ;;  %s1595_s11 = int_to_ptr.vmem [resolvable:$true] %s1594_s11  ;;  %s2180_s8 = int_to_ptr.vmem [resolvable:$false] %s2179_s8 }
  0x60   : > { %1844 = vmatprep.subr.bf16.mxu0 %v2250_v0  ;;  %1850 = vmatprep.subr.bf16.mxu1 %v2250_v0  ;;  %v2472_v7 = vld [vmem:[%s372_s20 + $0x10] sm:$0xff]   ;;  %v2476_v8 = vld [vmem:[%s372_s20 + $0x18] sm:$0xff]   ;;  %s2175_s29 = scalar_lea.vmem %s1595_s11, 128  ;;  %p2182_p10 = scmp.lt.s32.totalorder %s1595_s11, %s2180_s8 }
  0x61   : > { %p2176_p0 = scmp.ne.s32.totalorder %s1595_s11, %s2175_s29 }
  0x62   : > { %1835 = vmatmul.mubr.msk.bf16.vlgmr.msra.gmra.mxu0 %vm403_vm1, %v2460_v3  ;;  %1841 = vmatmul.mubr.msk.bf16.vlgmr.msra.gmra.mxu1 %vm403_vm1, %v2462_v4 }
  0x63   : > { %1845 = vmatpush3.bf16.msra.mxu0 %v2049_v5  ;;  %1851 = vmatpush3.bf16.msra.mxu1 %v2050_v6  ;;  %p2177_p5 = pnand %p2176_p0, %p2719_p4 }
  0x64   : > { %1846 = vmatprep.mubr.msk.bf16.mxu0 %vm2251_vm0, %v2250_v0  ;;  %1852 = vmatprep.mubr.msk.bf16.mxu1 %vm2251_vm0, %v2250_v0 }
  0x65   : > { %1970 = vmatprep.subr.msk.bf16.mxu0 %vm635_vm2, %v617_v9  ;;  %1866 = vmatprep.subr.bf16.mxu1 %v2053_v31  ;;  %p2178_p9 = pneg %p2177_p5 }
  0x6a   : > { %1847 = vmatmul.mubr.msk.bf16.vlgmr.msra.gmra.mxu0 %vm403_vm1, %v2472_v7  ;;  %1853 = vmatmul.mubr.msk.bf16.vlgmr.msra.gmra.mxu1 %vm403_vm1, %v2476_v8 }
  0x6b   : > { %1857 = vmatpush3.bf16.msra.mxu0 %v637_v10  ;;  %1867 = vmatpush3.bf16.msra.mxu1 %v2053_v31 }
  0x6c   : > { %1878 = vmatprep.subr.bf16.mxu0 %v2250_v0  ;;  %1868 = vmatprep.subr.bf16.mxu1 %v2054_v32 }
  0x6f   : > { %1869 = vmatpush3.bf16.msra.mxu1 %v2054_v32 }
  0x70   : > { %1884 = vmatprep.subr.bf16.mxu1 %v2250_v0 }
 0x122   : > { %v441_v11 = vpop.f32.mrf.mxu0  ;;  %v496_v12 = vpop.f32.mrf.mxu1 }
 0x124   : > { %v1836_v13 = vpop.f32.mrf.mxu0  ;;  %v1842_v14 = vpop.f32.mrf.mxu1 }
 0x126   : > { %v444_v15 = vpop.f32.mrf.mxu0  ;;  %v499_v17 = vpop.f32.mrf.mxu1 }
 0x127   : > { %v613_v16 = vpack.c.bf16 %v444_v15, %v441_v11  ;;  %v614_v18 = vpack.c.bf16 %v499_v17, %v496_v12 }
 0x128   : > { %v1837_v19 = vpop.f32.mrf.mxu0  ;;  %v1843_v20 = vpop.f32.mrf.mxu1 }
 0x129   : > { %1858 = vmatprep.mubr.msk.bf16.mxu0 %vm622_vm3, %v613_v16  ;;  %v2055_v19 = vld [vmem:[%s2691_s4 + $0x18] sm:$0xff]   ;;  %v2056_v20 = vld [vmem:[%s2691_s4 + $0x10] sm:$0xff]  }
 0x12a   : > { %v551_v21 = vpop.f32.mrf.mxu0  ;;  %1859 = vmatmul.mubr.msk.bf16.vlgmr.msra.gmra.mxu0 %vm622_vm3, %v614_v18  ;;  %v606_v22 = vpop.f32.mrf.mxu1 }
 0x12c   : > { %v1848_v23 = vpop.f32.mrf.mxu0  ;;  %v1854_v24 = vpop.f32.mrf.mxu1 }
 0x12e   : > { %v554_v25 = vpop.f32.mrf.mxu0  ;;  %v609_v27 = vpop.f32.mrf.mxu1 }
 0x12f   : > { %v615_v26 = vpack.c.bf16 %v554_v25, %v551_v21  ;;  %v616_v28 = vpack.c.bf16 %v609_v27, %v606_v22  ;;  %v980_v21 = vsub.s32 1, %v2496_v34 }
 0x130   : > { %v1849_v29 = vpop.f32.mrf.mxu0  ;;  %v1855_v30 = vpop.f32.mrf.mxu1 }
 0x131   : > { %1862 = vmatprep.mubr.msk.bf16.mxu0 %vm622_vm3, %v615_v26  ;;  %v981_v22 = vrot.slane %v2502_v36, %v980_v21 }
 0x132   : > { %1863 = vmatmul.mubr.msk.bf16.gmra.mxu0 %vm622_vm3, %v616_v28 }
 0x133   : > { %1880 = vmatprep.mubr.msk.bf16.mxu0 %vm2251_vm0, %v2250_v0 }
 0x1ea   : > { %v1860_v37 = vpop.f32.mrf.mxu0 }
 0x1eb   : > { %v682_v43 = vadd.f32 %v1860_v37, %v621_v38 }
 0x1ec   : > { %v673_v39 = vpop.f32.mrf.mxu0 }
 0x1ed   : > { %v674_v41 = vadd.f32 %v673_v39, %v621_v38  ;;  %v706_v50 = vmax.f32 %v682_v43, 0.0 }
 0x1ee   : > { %v1861_v40 = vpop.f32.mrf.mxu0 }
 0x1ef   : > { %v685_v42 = vadd.f32 %v1861_v40, %v621_v38  ;;  %v704_v48 = vmax.f32 %v674_v41, 0.0 }
 0x1f0   : > { %v676_v44 = vpop.f32.mrf.mxu0 }
 0x1f1   : > { %v677_v45 = vadd.f32 %v676_v44, %v621_v38  ;;  %v707_v46 = vmax.f32 %v685_v42, 0.0 }
 0x1f2   : > { %v1864_v47 = vpop.f32.mrf.mxu0 }
 0x1f3   : > { %v705_v49 = vmax.f32 %v677_v45, 0.0  ;;  %v698_v51 = vadd.f32 %v1864_v47, %v621_v38  ;;  %v717_v55 = vpack.c.bf16 %v707_v46, %v706_v50 }
 0x1f4   : > { %v689_v52 = vpop.f32.mrf.mxu0 }
 0x1f5   : > { %v716_v53 = vpack.c.bf16 %v705_v49, %v704_v48  ;;  %v690_v54 = vadd.f32 %v689_v52, %v621_v38  ;;  %v710_v58 = vmax.f32 %v698_v51, 0.0 }
 0x1f6   : > { %v1865_v56 = vpop.f32.mrf.mxu0 }
 0x1f7   : > { %v701_v57 = vadd.f32 %v1865_v56, %v621_v38  ;;  %1870 = vmatprep.mubr.msk.bf16.mxu1 %vm732_vm4, %v716_v53  ;;  %v708_v60 = vmax.f32 %v690_v54, 0.0 }
 0x1f8   : > { %v692_v59 = vpop.f32.mrf.mxu0  ;;  %1871 = vmatmul.mubr.msk.bf16.vlgmr.msra.gmra.mxu1 %vm732_vm4, %v717_v55 }
 0x1f9   : > { %v711_v61 = vmax.f32 %v701_v57, 0.0  ;;  %v693_v62 = vadd.f32 %v692_v59, %v621_v38 }
 0x1fb   : > { %v709_v63 = vmax.f32 %v693_v62, 0.0  ;;  %v719_v1 = vpack.c.bf16 %v711_v61, %v710_v58 }
 0x1fd   : > { %v718_v2 = vpack.c.bf16 %v709_v63, %v708_v60 }
 0x1ff   : > { %1874 = vmatprep.mubr.msk.bf16.mxu1 %vm732_vm4, %v718_v2 }
 0x200   : > { %1875 = vmatmul.mubr.msk.bf16.gmra.mxu1 %vm732_vm4, %v719_v1 }
 0x201   : > { %1886 = vmatprep.mubr.msk.bf16.mxu1 %vm2251_vm0, %v2250_v0 }
 0x2b8   : > { %v1872_v5 = vpop.f32.mrf.mxu1 }
 0x2ba   : > { %v779_v6 = vpop.f32.mrf.mxu1 }
 0x2bc   : > { %v1873_v9 = vpop.f32.mrf.mxu1 }
 0x2bd   : > { %v811_v10 = vpack.c.bf16 %v1873_v9, %v1872_v5 }
 0x2be   : > { %v782_v11 = vpop.f32.mrf.mxu1 }
 0x2bf   : > { %v810_v12 = vpack.c.bf16 %v782_v11, %v779_v6  ;;  %1885 = vmatpush3.bf16.msra.mxu1 %v811_v10 }
 0x2c0   : > { %v1876_v13 = vpop.f32.mrf.mxu1  ;;  %1896 = vmatprep.subr.bf16.mxu1 %v2250_v0 }
 0x2c1   : > { %1879 = vmatpush3.bf16.msra.mxu0 %v810_v12 }
 0x2c2   : > { %v795_v14 = vpop.f32.mrf.mxu1  ;;  %1887 = vmatmul.mubr.msk.bf16.vlgmr.msra.gmra.mxu1 %vm403_vm1, %v2462_v4  ;;  %1890 = vmatprep.subr.bf16.mxu0 %v2250_v0 }
 0x2c3   : > { %1898 = vmatprep.mubr.msk.bf16.mxu1 %vm2251_vm0, %v2250_v0 }
 0x2c4   : > { %v1877_v15 = vpop.f32.mrf.mxu1  ;;  %1881 = vmatmul.mubr.msk.bf16.vlgmr.msra.gmra.mxu0 %vm403_vm1, %v2460_v3 }
 0x2c5   : > { %v813_v16 = vpack.c.bf16 %v1877_v15, %v1876_v13  ;;  %1892 = vmatprep.mubr.msk.bf16.mxu0 %vm2251_vm0, %v2250_v0 }
 0x2c6   : > { %v798_v17 = vpop.f32.mrf.mxu1 }
 0x2c7   : > { %v812_v18 = vpack.c.bf16 %v798_v17, %v795_v14  ;;  %1897 = vmatpush3.bf16.msra.mxu1 %v813_v16  ;;  %v1266_v14 = vsub.s32 2, %v2496_v34  ;;  %v1286_v17 = vsub.s32 3, %v2496_v34 }
 0x2c8   : > { %1914 = vmatprep.subr.bf16.mxu1 %v2250_v0 }
 0x2c9   : > { %1891 = vmatpush3.bf16.msra.mxu0 %v812_v18  ;;  %v1267_v16 = vrot.slane %v2502_v36, %v1266_v14 }
 0x2ca   : > { %1899 = vmatmul.mubr.msk.bf16.vlgmr.msra.gmra.mxu1 %vm403_vm1, %v2476_v8  ;;  %1902 = vmatprep.subr.bf16.mxu0 %v2055_v19 }
 0x2cb   : > { %1916 = vmatprep.mubr.msk.bf16.mxu1 %vm2251_vm0, %v2250_v0 }
 0x2cc   : > { %1893 = vmatmul.mubr.msk.bf16.vlgmr.msra.gmra.mxu0 %vm403_vm1, %v2472_v7 }
 0x2cd   : > { %1903 = vmatpush3.bf16.msra.mxu0 %v2055_v19 }
 0x2ce   : > { %1904 = vmatprep.subr.bf16.mxu0 %v2056_v20 }
 0x2d1   : > { %1905 = vmatpush3.bf16.msra.mxu0 %v2056_v20 }
 0x2d2   : > { %1926 = vmatprep.subr.bf16.mxu0 %v2250_v0 }
 0x382   : > { %v889_v23 = vpop.f32.mrf.mxu1 }
 0x383   : > { %v984_v26 = vadd.f32 %v981_v22, %v889_v23  ;;  %v1287_v23 = vrot.slane %v2502_v36, %v1286_v17 }
 0x384   : > { %v848_v24 = vpop.f32.mrf.mxu0  ;;  %v1888_v25 = vpop.f32.mrf.mxu1 }
 0x385   : > { %v982_v29 = vadd.f32 %v981_v22, %v848_v24  ;;  %v992_v35 = vmax.f32 %v984_v26, 0.0 }
 0x386   : > { %v1882_v27 = vpop.f32.mrf.mxu0  ;;  %v892_v28 = vpop.f32.mrf.mxu1 }
 0x387   : > { %v985_v30 = vadd.f32 %v981_v22, %v892_v28  ;;  %v990_v40 = vmax.f32 %v982_v29, 0.0 }
 0x388   : > { %v851_v31 = vpop.f32.mrf.mxu0  ;;  %v1889_v32 = vpop.f32.mrf.mxu1 }
 0x389   : > { %v983_v33 = vadd.f32 %v981_v22, %v851_v31  ;;  %v993_v37 = vmax.f32 %v985_v30, 0.0 }
 0x38a   : > { %v1883_v38 = vpop.f32.mrf.mxu0  ;;  %v971_v39 = vpop.f32.mrf.mxu1 }
 0x38b   : > { %v991_v41 = vmax.f32 %v983_v33, 0.0  ;;  %v988_v43 = vadd.f32 %v981_v22, %v971_v39  ;;  %v1004_v47 = vpack.c.bf16 %v993_v37, %v992_v35 }
 0x38c   : > { %v930_v42 = vpop.f32.mrf.mxu0  ;;  %v1900_v44 = vpop.f32.mrf.mxu1 }
 0x38d   : > { %v1003_v45 = vpack.c.bf16 %v991_v41, %v990_v40  ;;  %v986_v46 = vadd.f32 %v981_v22, %v930_v42  ;;  %v996_v51 = vmax.f32 %v988_v43, 0.0 }
 0x38e   : > { %v1894_v48 = vpop.f32.mrf.mxu0  ;;  %v974_v49 = vpop.f32.mrf.mxu1 }
 0x38f   : > { %1906 = vmatprep.mubr.msk.bf16.mxu0 %vm732_vm4, %v1003_v45  ;;  %v989_v50 = vadd.f32 %v981_v22, %v974_v49  ;;  %v994_v54 = vmax.f32 %v986_v46, 0.0 }
 0x390   : > { %v933_v52 = vpop.f32.mrf.mxu0  ;;  %1907 = vmatmul.mubr.msk.bf16.vlgmr.msra.gmra.mxu0 %vm732_vm4, %v1004_v47  ;;  %v1901_v53 = vpop.f32.mrf.mxu1 }
 0x391   : > { %v987_v55 = vadd.f32 %v981_v22, %v933_v52  ;;  %v997_v56 = vmax.f32 %v989_v50, 0.0 }
 0x392   : > { %v1895_v57 = vpop.f32.mrf.mxu0 }
 0x393   : > { %v995_v58 = vmax.f32 %v987_v55, 0.0  ;;  %v1006_v59 = vpack.c.bf16 %v997_v56, %v996_v51 }
 0x395   : > { %v1005_v60 = vpack.c.bf16 %v995_v58, %v994_v54 }
 0x397   : > { %1910 = vmatprep.mubr.msk.bf16.mxu0 %vm732_vm4, %v1005_v60 }
 0x398   : > { %1911 = vmatmul.mubr.msk.bf16.gmra.mxu0 %vm732_vm4, %v1006_v59 }
 0x399   : > { %1928 = vmatprep.mubr.msk.bf16.mxu0 %vm2251_vm0, %v2250_v0 }
 0x450   : > { %v1908_v61 = vpop.f32.mrf.mxu0 }
 0x452   : > { %v1065_v62 = vpop.f32.mrf.mxu0 }
 0x454   : > { %v1909_v63 = vpop.f32.mrf.mxu0 }
 0x455   : > { %v1097_v9 = vpack.c.bf16 %v1909_v63, %v1908_v61 }
 0x456   : > { %v1068_v1 = vpop.f32.mrf.mxu0 }
 0x457   : > { %v1096_v2 = vpack.c.bf16 %v1068_v1, %v1065_v62  ;;  %v2252_v1 = vmov 0  }
 0x458   : > { %v1912_v5 = vpop.f32.mrf.mxu0  ;;  %2044 = vset.pattern.permute.xlu1 %v2252_v1  ;;  %2043 = vset.pattern.permute.xlu0 %v2252_v1 }
 0x459   : > { %1915 = vmatpush3.bf16.msra.mxu1 %v1096_v2  ;;  %v1322_v2 = vsub.s32 4, %v2496_v34 }
 0x45a   : > { %v1081_v6 = vpop.f32.mrf.mxu0  ;;  %1920 = vmatprep.subr.bf16.mxu1 %v2250_v0 }
 0x45c   : > { %v1913_v10 = vpop.f32.mrf.mxu0  ;;  %1917 = vmatmul.mubr.msk.bf16.vlgmr.msra.gmra.mxu1 %vm403_vm1, %v2460_v3 }
 0x45d   : > { %1921 = vmatpush3.bf16.msra.mxu1 %v1097_v9  ;;  %1922 = vmatprep.mubr.msk.bf16.mxu1 %vm2251_vm0, %v2250_v0  ;;  %v1099_v13 = vpack.c.bf16 %v1913_v10, %v1912_v5  ;;  %v1323_v5 = vrot.slane %v2502_v36, %v1322_v2 }
 0x45e   : > { %v1084_v11 = vpop.f32.mrf.mxu0  ;;  %1932 = vmatprep.subr.bf16.mxu1 %v2250_v0 }
 0x45f   : > { %v1098_v12 = vpack.c.bf16 %v1084_v11, %v1081_v6 }
 0x461   : > { %1927 = vmatpush3.bf16.msra.mxu0 %v1098_v12 }
 0x462   : > { %1938 = vmatprep.subr.bf16.mxu0 %v2250_v0 }
 0x464   : > { %1923 = vmatmul.mubr.msk.bf16.vlgmr.msra.gmra.mxu1 %vm403_vm1, %v2462_v4  ;;  %1929 = vmatmul.mubr.msk.bf16.vlgmr.msra.gmra.mxu0 %vm403_vm1, %v2472_v7 }
 0x465   : > { %1933 = vmatpush3.bf16.msra.mxu1 %v1099_v13  ;;  %1934 = vmatprep.mubr.msk.bf16.mxu1 %vm2251_vm0, %v2250_v0 }
 0x466   : > { %1950 = vmatprep.subr.bf16.mxu1 %v2250_v0  ;;  %1946 = vmatprep.mubr.msk.bf16.mxu0 %vm2251_vm0, %v2250_v0 }
 0x46c   : > { %1935 = vmatmul.mubr.msk.bf16.vlgmr.msra.gmra.mxu1 %vm403_vm1, %v2476_v8 }
 0x46d   : > { %1958 = vmatprep.mubr.msk.bf16.mxu1 %vm2251_vm0, %v2250_v0 }
 0x51c   : > { %v1134_v3 = vpop.f32.mrf.mxu1 }
 0x51d   : > { %v2596_v49 = vadd.f32 %v1267_v16, %v1134_v3 }
 0x51e   : > { %v1918_v4 = vpop.f32.mrf.mxu1 }
 0x51f   : > { %v1276_v57 = vmax.f32 %v2596_v49, 0.0 }
 0x520   : > { %v1137_v7 = vpop.f32.mrf.mxu1 }
 0x521   : > { %v2576_v29 = vadd.f32 %v1267_v16, %v1137_v7  ;;  %v1288_v62 = vmul.f32 %v1287_v23, %v1276_v57 }
 0x522   : > { %v1919_v15 = vpop.f32.mrf.mxu1 }
 0x523   : > { %v1277_v40 = vmax.f32 %v2576_v29, 0.0  ;;  %v1296_v63 = vsel %vm732_vm4, %v1288_v62, 0.0 }
 0x524   : > { %v1175_v18 = vpop.f32.mrf.mxu1  ;;  %v1216_v19 = vpop.f32.mrf.mxu0 }
 0x525   : > { %v2566_v20 = vadd.f32 %v1267_v16, %v1216_v19  ;;  %v2586_v42 = vadd.f32 %v1267_v16, %v1175_v18  ;;  %v1289_v50 = vmul.f32 %v1287_v23, %v1277_v40 }
 0x526   : > { %v1924_v21 = vpop.f32.mrf.mxu1  ;;  %v1930_v22 = vpop.f32.mrf.mxu0 }
 0x527   : > { %v1280_v8 = vmax.f32 %v2566_v20, 0.0  ;;  %v1278_v52 = vmax.f32 %v2586_v42, 0.0  ;;  %v1299_v59 = vsel %vm732_vm4, %v1289_v50, 0.0 }
 0x528   : > { %v1178_v24 = vpop.f32.mrf.mxu1  ;;  %v1219_v25 = vpop.f32.mrf.mxu0 }
 0x529   : > { %v2570_v26 = vadd.f32 %v1267_v16, %v1178_v24  ;;  %v2572_v27 = vadd.f32 %v1267_v16, %v1219_v25  ;;  %v1292_v28 = vmul.f32 %v1287_v23, %v1280_v8  ;;  %v1290_v60 = vmul.f32 %v1287_v23, %v1278_v52 }
 0x52a   : > { %v1925_v30 = vpop.f32.mrf.mxu1  ;;  %v1931_v31 = vpop.f32.mrf.mxu0 }
 0x52b   : > { %v1279_v32 = vmax.f32 %v2570_v26, 0.0  ;;  %v1281_v33 = vmax.f32 %v2572_v27, 0.0  ;;  %v1308_v35 = vsel %vm732_vm4, %v1292_v28, 0.0  ;;  %v1302_v61 = vsel %vm732_vm4, %v1290_v60, 0.0 }
 0x52c   : > { %v1257_v37 = vpop.f32.mrf.mxu1  ;;  %1309 = vadd.xlane.f32.xlu1 %v1308_v35 }
 0x52d   : > { %v2581_v38 = vadd.f32 %v1267_v16, %v1257_v37  ;;  %v1293_v39 = vmul.f32 %v1287_v23, %v1281_v33  ;;  %v1291_v45 = vmul.f32 %v1287_v23, %v1279_v32 }
 0x52e   : > { %v1936_v41 = vpop.f32.mrf.mxu1 }
 0x52f   : > { %v1282_v43 = vmax.f32 %v2581_v38, 0.0  ;;  %v1311_v44 = vsel %vm732_vm4, %v1293_v39, 0.0  ;;  %v1305_v55 = vsel %vm732_vm4, %v1291_v45, 0.0 }
 0x530   : > { %v1260_v46 = vpop.f32.mrf.mxu1  ;;  %1312 = vadd.xlane.f32.xlu1 %v1311_v44 }
 0x531   : > { %v2592_v47 = vadd.f32 %v1267_v16, %v1260_v46  ;;  %v1294_v48 = vmul.f32 %v1287_v23, %v1282_v43 }
 0x532   : > { %v1937_v51 = vpop.f32.mrf.mxu1 }
 0x533   : > { %v1283_v53 = vmax.f32 %v2592_v47, 0.0  ;;  %v1314_v54 = vsel %vm732_vm4, %v1294_v48, 0.0 }
 0x534   : > { %1315 = vadd.xlane.f32.xlu0 %v1314_v54  ;;  %1306 = vadd.xlane.f32.xlu1 %v1305_v55 }
 0x535   : > { %v1295_v56 = vmul.f32 %v1287_v23, %v1283_v53 }
 0x537   : > { %v1317_v58 = vsel %vm732_vm4, %v1295_v56, 0.0 }
 0x538   : > { %1318 = vadd.xlane.f32.xlu0 %v1317_v58  ;;  %1300 = vadd.xlane.f32.xlu1 %v1299_v59 }
 0x53c   : > { %1303 = vadd.xlane.f32.xlu0 %v1302_v61 }
 0x540   : > { %1297 = vadd.xlane.f32.xlu0 %v1296_v63 }
 0x5b5   : > { %v1310_v6 = vpop.xlane.xlu1 %1309 }
 0x5b6   : > { %v1328_v9 = vadd.f32 %v1323_v5, %v1310_v6 }
 0x5b8   : > { %2059 = vtanh.f32 %v1328_v9 }
 0x5b9   : > { %v1313_v10 = vpop.xlane.xlu1 %1312 }
 0x5ba   : > { %v1329_v11 = vadd.f32 %v1323_v5, %v1313_v10 }
 0x5bc   : > { %2061 = vtanh.f32 %v1329_v11 }
 0x5bd   : > { %v1316_v12 = vpop.xlane.xlu0 %1315  ;;  %v1307_v3 = vpop.xlane.xlu1 %1306 }
 0x5be   : > { %v1330_v13 = vadd.f32 %v1323_v5, %v1316_v12  ;;  %v1327_v7 = vadd.f32 %v1323_v5, %v1307_v3 }
 0x5c0   : > { %2063 = vtanh.f32 %v1330_v13 }
 0x5c1   : > { %v1319_v4 = vpop.xlane.xlu0 %1318  ;;  %v1301_v15 = vpop.xlane.xlu1 %1300 }
 0x5c2   : > { %v1331_v14 = vadd.f32 %v1323_v5, %v1319_v4  ;;  %v1325_v21 = vadd.f32 %v1323_v5, %v1301_v15 }
 0x5c4   : > { %2065 = vtanh.f32 %v1331_v14 }
 0x5c5   : > { %v2060_v16 = vpop.eup %2059  ;;  %v1304_v17 = vpop.xlane.xlu0 %1303  ;;  %2067 = vtanh.f32 %v1327_v7 }
 0x5c6   : > { %v1348_v18 = vmul.f32 1.442695, %v2060_v16  ;;  %v1326_v19 = vadd.f32 %v1323_v5, %v1304_v17 }
 0x5c8   : > { %2069 = vpow2.f32 %v1348_v18 }
 0x5c9   : > { %v2062_v22 = vpop.eup %2061  ;;  %2071 = vtanh.f32 %v1326_v19  ;;  %v1298_v23 = vpop.xlane.xlu0 %1297 }
 0x5ca   : > { %v1350_v24 = vmul.f32 1.442695, %v2062_v22  ;;  %v1324_v25 = vadd.f32 %v1323_v5, %v1298_v23  ;;  %2073 = vtanh.f32 %v1325_v21  ;;  %v1357_v5 = vld [vmem:[%s2437_s19 + $0x4] sm:$0xf] }
 0x5cc   : > { %2075 = vpow2.f32 %v1350_v24 }
 0x5cd   : > { %v2064_v28 = vpop.eup %2063  ;;  %2077 = vtanh.f32 %v1324_v25 }
 0x5ce   : > { %v1352_v30 = vmul.f32 1.442695, %v2064_v28 }
 0x5d0   : > { %2079 = vpow2.f32 %v1352_v30 }
 0x5d1   : > { %v2066_v31 = vpop.eup %2065 }
 0x5d2   : > { %v1354_v35 = vmul.f32 1.442695, %v2066_v31  ;;  %v2068_v37 = vpop.eup %2067 }
 0x5d3   : > { %v1346_v46 = vmul.f32 1.442695, %v2068_v37 }
 0x5d4   : > { %2081 = vpow2.f32 %v1354_v35 }
 0x5d5   : > { %v2070_v39 = vpop.eup %2069 }
 0x5d6   : > { %v2072_v41 = vpop.eup %2071  ;;  %1380 = vperm.xlu1 %2044, %v2070_v39  }
 0x5d7   : > { %v1344_v44 = vmul.f32 1.442695, %v2072_v41  ;;  %v2074_v45 = vpop.eup %2073 }
 0x5d8   : > { %v1342_v54 = vmul.f32 1.442695, %v2074_v45 }
 0x5d9   : > { %v2076_v48 = vpop.eup %2075  ;;  %2083 = vpow2.f32 %v1344_v44 }
 0x5da   : > { %v2078_v50 = vpop.eup %2077  ;;  %1385 = vperm.xlu1 %2044, %v2076_v48   ;;  %2085 = vpow2.f32 %v1346_v46  ;;  %v1456_v60 = vpack.c.bf16 %v2076_v48, %v2070_v39 }
 0x5db   : > { %v1340_v51 = vmul.f32 1.442695, %v2078_v50 }
 0x5dd   : > { %v2080_v55 = vpop.eup %2079  ;;  %2087 = vpow2.f32 %v1340_v51 }
 0x5de   : > { %1390 = vperm.xlu0 %2043, %v2080_v55   ;;  %2089 = vpow2.f32 %v1342_v54 }
 0x5e1   : > { %v2082_v56 = vpop.eup %2081 }
 0x5e2   : > { %v1457_v58 = vpack.c.bf16 %v2082_v56, %v2080_v55 }
 0x5e4   : > { %1951 = vmatpush3.bf16.msra.mxu1 %v1457_v58 }
 0x5e5   : > { %1952 = vmatprep.subr.bf16.mxu1 %v2250_v0 }
 0x5e6   : > { %v2084_v59 = vpop.eup %2083 }
 0x5e7   : > { %1370 = vperm.xlu1 %2044, %v2084_v59   ;;  %v2086_v61 = vpop.eup %2085 }
 0x5e8   : > { %1953 = vmatpush3.bf16.msra.mxu1 %v1456_v60  ;;  %v1455_v62 = vpack.c.bf16 %v2086_v61, %v2084_v59 }
 0x5e9   : > { %1954 = vmatprep.subr.bf16.mxu1 %v2250_v0 }
 0x5ea   : > { %v2088_v63 = vpop.eup %2087 }
 0x5eb   : > { %1395 = vperm.xlu1 %2044, %v2082_v56   ;;  %v2090_v1 = vpop.eup %2089 }
 0x5ec   : > { %1955 = vmatpush3.bf16.msra.mxu1 %v1455_v62  ;;  %v1454_v2 = vpack.c.bf16 %v2090_v1, %v2088_v63 }
 0x5ed   : > { %1956 = vmatprep.subr.bf16.mxu1 %v2250_v0 }
 0x5ef   : > { %1375 = vperm.xlu1 %2044, %v2086_v61  }
 0x5f0   : > { %1957 = vmatpush3.bf16.msra.mxu1 %v1454_v2 }
 0x5f3   : > { %1360 = vperm.xlu1 %2044, %v2088_v63   ;;  %1959 = vmatmul.mubr.msk.bf16.vlgmr.msra.gmra.mxu1 %vm1410_vm5, %v1357_v5 }
 0x5f7   : > { %1365 = vperm.xlu1 %2044, %v2090_v1  }
 0x651   : > { %v1381_v6 = vpop.permute.xlu1 %1380 }
 0x652   : > { %v1402_v15 = vmul.f32 %v1381_v6, %v1280_v8 }
 0x655   : > { %v1386_v9 = vpop.permute.xlu1 %1385 }
 0x656   : > { %v1403_v4 = vmul.f32 %v1386_v9, %v1281_v33 }
 0x658   : > { %v1408_v16 = vpack.c.bf16 %v1403_v4, %v1402_v15 }
 0x659   : > { %v1391_v11 = vpop.permute.xlu0 %1390 }
 0x65a   : > { %v1404_v13 = vmul.f32 %v1391_v11, %v1282_v43 }
 0x662   : > { %v1371_v10 = vpop.permute.xlu1 %1370 }
 0x663   : > { %v1400_v47 = vmul.f32 %v1371_v10, %v1278_v52 }
 0x666   : > { %v1396_v12 = vpop.permute.xlu1 %1395 }
 0x667   : > { %v1405_v3 = vmul.f32 %v1396_v12, %v1283_v53  ;;  %v2057_v53 = vld [vmem:[#allocation7 + $0x8] sm:$0xff]  }
 0x669   : > { %v1409_v14 = vpack.c.bf16 %v1405_v3, %v1404_v13 }
 0x66a   : > { %v1376_v7 = vpop.permute.xlu1 %1375 }
 0x66b   : > { %1939 = vmatpush3.bf16.msra.mxu0 %v1409_v14  ;;  %v1401_v38 = vmul.f32 %v1376_v7, %v1279_v32  ;;  %v1356_v32 = vld [vmem:[%s2437_s19] sm:$0xf]  ;;  %s1772_s19 = sshll.u32 %s2315_s28, 7  ;;  %s2181_s28 = scalar_lea.vmem %s2180_s8, 256 }
 0x66c   : > { %1940 = vmatprep.subr.bf16.mxu0 %v2250_v0  ;;  %s1592_s20 = scalar_lea.hbm %s2694_s7, %s1772_s19  ;;  %p2183_p1 = scmp.lt.s32.totalorder %s2181_s28, %s2175_s29 }
 0x66d   : > { %v1407_v27 = vpack.c.bf16 %v1401_v38, %v1400_v47 }
 0x66e   : > { %v1361_v43 = vpop.permute.xlu1 %1360  ;;  %p2184_p12 = por %p2183_p1, %p2182_p10 }
 0x66f   : > { %1941 = vmatpush3.bf16.msra.mxu0 %v1408_v16  ;;  %v1398_v20 = vmul.f32 %v1361_v43, %v1276_v57  ;;  %v2058_v57 = vld [vmem:[#allocation7] sm:$0xff]  }
 0x670   : > { %1942 = vmatprep.subr.bf16.mxu0 %v2250_v0  ;;  %p2185_p6 = pnand %p2184_p12, %p2178_p9 }
 0x672   : > { %v1366_v33 = vpop.permute.xlu1 %1365 }
 0x673   : > { %v1399_v8 = vmul.f32 %v1366_v33, %v1277_v40  ;;  %1943 = vmatpush3.bf16.msra.mxu0 %v1407_v27 }
 0x674   : > { %1944 = vmatprep.subr.bf16.mxu0 %v2250_v0 }
 0x675   : > { %v1406_v26 = vpack.c.bf16 %v1399_v8, %v1398_v20 }
 0x677   : > { %1945 = vmatpush3.bf16.msra.mxu0 %v1406_v26 }
 0x678   : > { %1962 = vmatprep.subr.bf16.mxu0 %v2250_v0 }
 0x67a   : > { %1947 = vmatmul.mubr.msk.bf16.vlgmr.msra.gmra.mxu0 %vm1410_vm5, %v1356_v32 }
 0x67b   : > { %1963 = vmatpush3.bf16.msra.mxu0 %v2057_v53  ;;  %1966 = vmatprep.mubr.msk.bf16.mxu0 %vm2251_vm0, %v2250_v0 }
 0x67c   : > { %1964 = vmatprep.subr.bf16.mxu0 %v2250_v0  ;;  %v1516_v0 = vsub.s32 5, %v2496_v34 }
 0x67e   : > { %v1517_v28 = vrot.slane %v2502_v36, %v1516_v0 }
 0x67f   : > { %1965 = vmatpush3.bf16.msra.mxu0 %v2058_v57 }
 0x6b3   : > { %v1495_v42 = vpop.f32.mrf.mxu1 }
 0x6b4   : > { %v1501_v29 = vmax.f32 %v1495_v42, 1e-30 }
 0x6b5   : > { %v1960_v40 = vpop.f32.mrf.mxu1 }
 0x6b6   : > { %2091 = vrcp.f32 %v1501_v29 }
 0x6b7   : > { %v1498_v49 = vpop.f32.mrf.mxu1 }
 0x6b9   : > { %v1961_v52 = vpop.f32.mrf.mxu1 }
 0x6c3   : > { %v2092_v17 = vpop.eup %2091 }
 0x6c4   : > { %1505 = vperm.xlu1 %2044, %v2092_v17  }
 0x73a   : > { %v1448_v18 = vpop.f32.mrf.mxu0 }
 0x73c   : > { %v1948_v19 = vpop.f32.mrf.mxu0 }
 0x73e   : > { %v1451_v21 = vpop.f32.mrf.mxu0 }
 0x73f   : > { %v1506_v22 = vpop.permute.xlu1 %1505 }
 0x740   : > { %v1508_v23 = vmul.f32 %v1506_v22, %v1448_v18  ;;  %v1949_v24 = vpop.f32.mrf.mxu0 }
 0x742   : > { %v1509_v25 = vpack.c.bf16 %v1508_v23, %v1508_v23 }
 0x744   : > { %1967 = vmatmul.mubr.msk.bf16.vlgmr.msra.gmra.mxu0 %vm732_vm4, %v1509_v25 }
 0x804   : > { %v1567_v30 = vpop.f32.mrf.mxu0 }
 0x805   : > { %v1568_v31 = vadd.f32 %v1567_v30, %v1517_v28 }
 0x806   : > { %v1968_v35 = vpop.f32.mrf.mxu0 }
 0x807   : > { %v1573_v37 = vmul.f32 %v1568_v31, %v1568_v31 }
 0x808   : > { %v1570_v39 = vpop.f32.mrf.mxu0 }
 0x809   : > { %1574 = vadd.xlane.f32.xlu0 %v1573_v37 }
 0x80a   : > { %v1969_v41 = vpop.f32.mrf.mxu0 }
 0x892   : > { %v1575_v44 = vpop.xlane.xlu0 %1574 }
 0x893   : > { %v1576_v45 = vmax.f32 %v1575_v44, 1e-24 }
 0x895   : > { %2093 = vrsqrt.f32 %v1576_v45 }
 0x8a2   : > { %v2094_v46 = vpop.eup %2093 }
 0x8a3   : > { %v1578_v34 = vmul.f32 %v2094_v46, %v1568_v31 }
 0x8a5   : > { %1579 = vst [vmem:[%s359_s15] sm:$0xff] %v1578_v34 }
 0x8a6   : > { %2188 = shalt.err (!%p2185_p6)
}
 0x8a7   : > { %s2189_s21 = scalar_lea.hbm %s1592_s20, 128  ;;  %s2193_s9 = scalar_lea.hbm %s2694_s7, 256 }
 0x8a8   : > { %p2190_p7 = scmp.ne.s32.totalorder %s1592_s20, %s2189_s21  ;;  %p2194_p3 = scmp.lt.s32.totalorder %s1592_s20, %s2694_s7 }
 0x8a9   : > { %p2195_p8 = scmp.lt.s32.totalorder %s2193_s9, %s2189_s21 }
 0x8aa   : > { %p2191_p11 = pnand %p2190_p7, %p2719_p4 }
 0x8ab   : > { %p2196_p2 = por %p2195_p8, %p2194_p3 }
 0x8ac   : > { %p2192_p13 = pneg %p2191_p11 }
 0x8ae   : > { %p2197_p0 = pnand %p2196_p2, %p2192_p13 }
 0x8b0   : > { %2200 = shalt.err (!%p2197_p0)
}
 0x8b1   : > { %1981 = dma.vmem_to_hbm [thread:$0]  (%p2719_p4), %s1595_s11, 128, %s1592_s20, %s1581_s23  }
 0x8b2 PF: > { %s1606_s26 = sand.u32 1, %s2231_s24   ;;  %p2720_p5 = scmp.ne.s32.totalorder %s2709_s14, 0 }
 0x8b3   : > { %p2721_p9 = scmp.ge.s32.totalorder %s2243_s27, 2  ;;  %s1607_s12 = scalar_lea.sflag [#allocation4], %s1606_s26 }
 0x8b5   : > { %p1995_p10 = pnand %p2721_p9, %p2720_p5 }
 0x8b7   : > { %p1996_p1 = pneg %p1995_p10 }
 0x8b9   : > { %2226 = dma.done.wait (%p1996_p1), %s1607_s12, 128  }
 0x8ba   : > { %2228 = vsyncadd (%p1996_p1), %s1607_s12, 4294967168  ;;  %s2722_s27 = sld [smem:[#allocation13_spill]]  ;;  %s2725_s24 = smov %s2235_s25 }
 0x8bb   : > { %s2723_s19 = sld [smem:[#allocation12_spill]] }
 0x8bc   : > { %s2724_s26 = sld [smem:[#allocation14_spill]] }
 0x8c0   : > { %p21_p12 = scmp.ge.s32.totalorder %s2722_s27, 4  }
 0x8c1   : > { %s2726_s25 = smov %s2723_s19 }
 0x8c2   :  { %23 = sbr.rel (!%p21_p12) target bundleno = 8 (0x8), region = 108 }
 0x8c7   :  { %1612 = vsyncpa [#allocation3], 1 }
 0x8c8   :  { %1614 = vsyncpa [#allocation3 + $0x1], 1 }
 0x8c9   :  { %1615 = vsyncpa [#allocation6], 1 }
 0x8ca   :  { %1616 = vsyncpa [#allocation4], 1 }
 0x8cb   :  { %1618 = vsyncpa [#allocation4 + $0x1], 1 }

</bundles_post_ra>
